<compile_context>
chip_gen: v6e
topology: v6e:2x2x1
jax: 0.10.0
libtpu: 0.0.40
codegen_flags: <defaults>
</compile_context>

<pallas_src>
import functools

import jax
import jax.numpy as jnp
from jax.experimental import pallas as pl
from jax.experimental.pallas import tpu as pltpu

OUTPUT_SIZE = 1
FLAGS = {"rnn_cells": 32}


def _lstm_cell_module_kernel(x_ref, wih_ref, whh_ref, b_ref, wd_ref, bd_ref,
                             packed_ref, *, T, B, H):
    """Single-invocation LSTM forward + final Linear.

    x_ref      : (T*B, Kpad) time-major flattened inputs (row = t*B + b), feature
                 dim zero-padded to Kpad >= 8
    wih_ref    : (Kpad, 4H)  input->gate weights, PyTorch gate order (i, f, g, o)
    whh_ref    : (4H, 4H)    hidden->gate weights, nonzero only in rows [H, 2H)
    b_ref      : (1, 4H)     combined gate bias (b_ih + b_hh)
    wd_ref     : (1, 4H)     d1 weight row, nonzero only in lanes [H, 2H)
    bd_ref     : (1, 4H)     d1 bias at lane 0, zeros elsewhere
    packed_ref : (B, 4H)     out: lane 0 = d1(h_T), lanes [H,2H) = h_T, [3H,4H) = c_T
    """
    G = 4 * H

    # Hoisted input projection + bias: one (T*B, Kpad) x (Kpad, 4H) MXU pass,
    # bias broadcast once (not per time step).
    xw = jnp.dot(x_ref[...], wih_ref[...],
                 preferred_element_type=jnp.float32) + b_ref[...]
    # TODO(synk): hold W_hh resident in the MXU across the unrolled steps via
    # pltpu.matmul_push_rhs / matmul_acc_lhs / matmul_pop; left as jnp.dot on a
    # loop-invariant RHS so Mosaic chooses the lowering.
    whh = whh_ref[...]

    lane = jax.lax.broadcasted_iota(jnp.int32, (B, G), 1)
    is_g = (lane >= 2 * H) & (lane < 3 * H)      # tanh lanes (cell gate)
    r1 = (lane >= H) & (lane < 2 * H)            # state lanes: h_n / c_n live here
    r3 = lane >= 3 * H                           # packed-output c_n lanes
    is_out = lane < OUTPUT_SIZE                  # packed-output d1 lane(s)

    def lstm_step(gates, c_prev):
        # Single EUP pass per step: sigmoid(x) = 0.5 * (1 + tanh(x / 2)).
        pre = jnp.where(is_g, gates, 0.5 * gates)
        th = jnp.tanh(pre)
        act = jnp.where(is_g, th, 0.5 + 0.5 * th)
        # act = [sig(i) | sig(f) | tanh(g) | sig(o)] on one full vreg.
        # Independent XLU rolls of `act` only (co-issue on the 2-3 XLUs).
        # Shift 2H on a 4H axis, and the H x 3H product landing in lanes
        # [H, 2H), are both independent of the hardware roll direction.
        o_al = pltpu.roll(act, 2 * H, axis=1)                      # sig(o) -> [H,2H)
        ig = pltpu.roll(act, H, axis=1) * pltpu.roll(act, 3 * H, axis=1)
        c_new = ig if c_prev is None else act * c_prev + ig        # f*c + i*g in [H,2H)
        h_new = o_al * jnp.tanh(c_new)                             # o*tanh(c) in [H,2H)
        return h_new, c_new

    # Peeled t = 0 (h = c = 0): no h@W_hh matmul, no f*c_prev term.
    # h/c live in lanes [H, 2H); other lanes carry bounded (|.|<=T) garbage that
    # is annihilated by the zero rows of whh / the zero lanes of wd_ref and is
    # masked out of the packed output.
    h, c = lstm_step(xw[0:B, :], None)

    # Remaining steps, fully unrolled (T small, static): static sublane-aligned
    # slices of xw; per step one (B,4H)x(4H,4H) matmul plus full-vreg
    # EUP/VPU/XLU work — no sub-vreg slicing on the critical path.
    for t in range(1, T):
        gates = xw[t * B:(t + 1) * B, :] + jnp.dot(
            h, whh, preferred_element_type=jnp.float32)
        h, c = lstm_step(gates, c)

    # d1(h_T) without an MXU epilogue: masked multiply by the broadcast w_d1
    # row (zeros outside lanes [H,2H)) + lane reduction.
    d1 = jnp.sum(h * wd_ref[...], axis=1, keepdims=True)           # (B, 1)

    # Lane-dense packed output [d1 | h_T | 0 | c_T]: single unmasked vst.
    packed_ref[...] = (jnp.where(is_out, d1, 0.0) + bd_ref[...]
                       + jnp.where(r1, h, 0.0)
                       + jnp.where(r3, pltpu.roll(c, 2 * H, axis=1), 0.0))


def prepare_cell_module_params(w_ih, w_hh, b_gates, w_d1, b_d1):
    """Pad/align weights for the kernel. Call ONCE, outside jit.

    w_ih   : (I, 4H)  input->gate weights, PyTorch gate order (i, f, g, o),
                      pre-transposed to (in, out)
    w_hh   : (H, 4H)  hidden->gate weights
    b_gates: (1, 4H)  combined bias; pass b_ih + b_hh when importing torch weights
    w_d1   : (H, 1)   d1 weight (pre-transposed)
    b_d1   : (1, 1)   d1 bias
    """
    I, G = w_ih.shape
    H = w_hh.shape[0]
    assert G == 4 * H
    k_pad = max(8, I)  # sublane-align the tiny contraction dim of X @ W_ih
    wih_pad = jnp.zeros((k_pad, G), jnp.float32).at[:I, :].set(w_ih)
    whh_pad = jnp.zeros((G, G), jnp.float32).at[H:2 * H, :].set(w_hh)
    wd_row = jnp.zeros((1, G), jnp.float32).at[0, H:2 * H].set(w_d1[:, 0])
    bd_row = jnp.zeros((1, G), jnp.float32).at[0, :OUTPUT_SIZE].set(
        jnp.reshape(b_d1, (-1,))[:OUTPUT_SIZE])
    return wih_pad, whh_pad, b_gates.astype(jnp.float32), wd_row, bd_row


def cell_module_forward(x_btI, wih_pad, whh_pad, b_gates, wd_row, bd_row):
    """x_btI: (B, T, I) float32, batch_first like the PyTorch module.

    Weights must come from prepare_cell_module_params (padded/aligned once).
    Returns (out (B,1), (h_n (B,H), c_n (B,H)), updated_state=None).
    """
    B, T, I = x_btI.shape
    G = whh_pad.shape[0]
    H = G // 4
    k_pad = wih_pad.shape[0]

    # Time-major flatten (row = t*B + b) + pad the tiny feature dim. ~2 KiB.
    x_flat = jnp.transpose(x_btI, (1, 0, 2)).reshape(T * B, I)
    x_flat = jnp.pad(x_flat, ((0, 0), (0, k_pad - I)))

    packed = pl.pallas_call(
        functools.partial(_lstm_cell_module_kernel, T=T, B=B, H=H),
        out_shape=jax.ShapeDtypeStruct((B, G), jnp.float32),
    )(x_flat, wih_pad, whh_pad, b_gates, wd_row, bd_row)

    out = packed[:, :OUTPUT_SIZE]
    h_n = packed[:, H:2 * H]
    c_n = packed[:, 3 * H:]

    # TODO(synk): split_rnn_outputs' `updated_state` is model-specific (skip-RNN
    # style state-update gate) and undefined for a plain LSTM; return None.
    updated_state = None
    return out, (h_n, c_n), updated_state


def _reference_forward(x_btI, w_ih, w_hh, b_gates, w_d1, b_d1):
    """Pure-JAX reference (lax.scan LSTM) for the correctness check."""
    B, T, I = x_btI.shape
    H = w_hh.shape[0]
    x_tbI = jnp.transpose(x_btI, (1, 0, 2))

    def step(carry, x_t):
        h, c = carry
        gates = x_t @ w_ih + h @ w_hh + b_gates
        i_g = jax.nn.sigmoid(gates[:, 0 * H:1 * H])
        f_g = jax.nn.sigmoid(gates[:, 1 * H:2 * H])
        g_g = jnp.tanh(gates[:, 2 * H:3 * H])
        o_g = jax.nn.sigmoid(gates[:, 3 * H:4 * H])
        c_new = f_g * c + i_g * g_g
        h_new = o_g * jnp.tanh(c_new)
        return (h_new, c_new), None

    (h_n, c_n), _ = jax.lax.scan(
        step, (jnp.zeros((B, H), jnp.float32), jnp.zeros((B, H), jnp.float32)),
        x_tbI)
    return h_n @ w_d1 + b_d1, h_n, c_n


if __name__ == "__main__":
    B, T, I = 8, 8, 2                 # adding task: 2 input features per step
    H = FLAGS["rnn_cells"]            # 32  -> 4H = 128 (one full lane dim)

    key = jax.random.PRNGKey(0)
    k_x, k_wih, k_whh, k_b, k_wd, k_bd = jax.random.split(key, 6)

    x = jax.random.normal(k_x, (B, T, I), dtype=jnp.float32)
    scale = 1.0 / jnp.sqrt(jnp.float32(H))
    w_ih = jax.random.uniform(k_wih, (I, 4 * H), jnp.float32, -scale, scale)
    w_hh = jax.random.uniform(k_whh, (H, 4 * H), jnp.float32, -scale, scale)
    b_g = jax.random.uniform(k_b, (1, 4 * H), jnp.float32, -scale, scale)
    w_d1 = jax.random.uniform(k_wd, (H, OUTPUT_SIZE), jnp.float32, -scale, scale)
    b_d1 = jax.random.uniform(k_bd, (1, OUTPUT_SIZE), jnp.float32, -scale, scale)

    # Pad/align weights ONCE, outside the jitted forward.
    params = prepare_cell_module_params(w_ih, w_hh, b_g, w_d1, b_d1)
    params = jax.block_until_ready(params)

    fwd = jax.jit(cell_module_forward)
    out, (h_n, c_n), _ = fwd(x, *params)
    jax.block_until_ready((out, h_n, c_n))

    ref_out, ref_h, ref_c = _reference_forward(x, w_ih, w_hh, b_g, w_d1, b_d1)
    assert jnp.allclose(out, ref_out, atol=1e-4, rtol=1e-4), "output mismatch"
    assert jnp.allclose(h_n, ref_h, atol=1e-4, rtol=1e-4), "h_n mismatch"
    assert jnp.allclose(c_n, ref_c, atol=1e-4, rtol=1e-4), "c_n mismatch"

    print("KERNEL_OK")
</pallas_src>

<mosaic_0001>
module attributes {stable_mosaic.version = 11 : i64} {
  func.func @_lstm_cell_module_kernel(%arg0: memref<64x8xf32, #tpu.memory_space<vmem>>, %arg1: memref<8x128xf32, #tpu.memory_space<vmem>>, %arg2: memref<128x128xf32, #tpu.memory_space<vmem>>, %arg3: memref<1x128xf32, #tpu.memory_space<vmem>>, %arg4: memref<1x128xf32, #tpu.memory_space<vmem>>, %arg5: memref<1x128xf32, #tpu.memory_space<vmem>>, %arg6: memref<8x128xf32, #tpu.memory_space<vmem>>) attributes {dimension_semantics = [], scalar_prefetch = 0 : i64, scratch_operands = 0 : i64, tpu.core_type = #tpu.core_type<tc>} {
    %c0 = arith.constant 0 : index
    %c0_0 = arith.constant 0 : index
    %0 = vector.load %arg0[%c0, %c0_0] : memref<64x8xf32, #tpu.memory_space<vmem>>, vector<64x8xf32>
    %c0_1 = arith.constant 0 : index
    %c0_2 = arith.constant 0 : index
    %1 = vector.load %arg1[%c0_1, %c0_2] : memref<8x128xf32, #tpu.memory_space<vmem>>, vector<8x128xf32>
    %cst = arith.constant dense<0.000000e+00> : vector<64x128xf32>
    %2 = tpu.matmul %0, %1, %cst {dimension_numbers = #tpu.dot_dimension_numbers<[1], [0], [0], [1], [0, 0, 1, 1], [], []>} : vector<64x8xf32>, vector<8x128xf32>, vector<64x128xf32> -> vector<64x128xf32>
    %c0_3 = arith.constant 0 : index
    %c0_4 = arith.constant 0 : index
    %3 = vector.load %arg3[%c0_3, %c0_4] : memref<1x128xf32, #tpu.memory_space<vmem>>, vector<1x128xf32>
    %4 = vector.broadcast %3 : vector<1x128xf32> to vector<64x128xf32>
    %5 = arith.addf %2, %4 : vector<64x128xf32>
    %c0_5 = arith.constant 0 : index
    %c0_6 = arith.constant 0 : index
    %6 = vector.load %arg2[%c0_5, %c0_6] : memref<128x128xf32, #tpu.memory_space<vmem>>, vector<128x128xf32>
    %7 = tpu.iota {dimensions = array<i32: 1>} : vector<8x128xi32>
    %c64_i32 = arith.constant 64 : i32
    %8 = vector.broadcast %c64_i32 : i32 to vector<8x128xi32>
    %9 = arith.cmpi sge, %7, %8 : vector<8x128xi32>
    %c96_i32 = arith.constant 96 : i32
    %10 = vector.broadcast %c96_i32 : i32 to vector<8x128xi32>
    %11 = arith.cmpi slt, %7, %10 : vector<8x128xi32>
    %12 = arith.andi %9, %11 : vector<8x128xi1>
    %c32_i32 = arith.constant 32 : i32
    %13 = vector.broadcast %c32_i32 : i32 to vector<8x128xi32>
    %14 = arith.cmpi sge, %7, %13 : vector<8x128xi32>
    %c64_i32_7 = arith.constant 64 : i32
    %15 = vector.broadcast %c64_i32_7 : i32 to vector<8x128xi32>
    %16 = arith.cmpi slt, %7, %15 : vector<8x128xi32>
    %17 = arith.andi %14, %16 : vector<8x128xi1>
    %c96_i32_8 = arith.constant 96 : i32
    %18 = vector.broadcast %c96_i32_8 : i32 to vector<8x128xi32>
    %19 = arith.cmpi sge, %7, %18 : vector<8x128xi32>
    %c1_i32 = arith.constant 1 : i32
    %20 = vector.broadcast %c1_i32 : i32 to vector<8x128xi32>
    %21 = arith.cmpi slt, %7, %20 : vector<8x128xi32>
    %22 = vector.extract_strided_slice %5 {offsets = [0, 0], sizes = [8, 128], strides = [1, 1]} : vector<64x128xf32> to vector<8x128xf32>
    %cst_9 = arith.constant 5.000000e-01 : f32
    %23 = vector.broadcast %cst_9 : f32 to vector<8x128xf32>
    %24 = arith.mulf %23, %22 : vector<8x128xf32>
    %25 = arith.select %12, %22, %24 : vector<8x128xi1>, vector<8x128xf32>
    %26 = math.tanh %25 : vector<8x128xf32>
    %cst_10 = arith.constant 5.000000e-01 : f32
    %27 = vector.broadcast %cst_10 : f32 to vector<8x128xf32>
    %28 = arith.mulf %27, %26 : vector<8x128xf32>
    %cst_11 = arith.constant 5.000000e-01 : f32
    %29 = vector.broadcast %cst_11 : f32 to vector<8x128xf32>
    %30 = arith.addf %29, %28 : vector<8x128xf32>
    %31 = arith.select %12, %26, %30 : vector<8x128xi1>, vector<8x128xf32>
    %c64_i32_12 = arith.constant 64 : i32
    %32 = tpu.dynamic_rotate %31 by %c64_i32_12 dim 1 : vector<8x128xf32>, i32 -> vector<8x128xf32>
    %c32_i32_13 = arith.constant 32 : i32
    %33 = tpu.dynamic_rotate %31 by %c32_i32_13 dim 1 : vector<8x128xf32>, i32 -> vector<8x128xf32>
    %c96_i32_14 = arith.constant 96 : i32
    %34 = tpu.dynamic_rotate %31 by %c96_i32_14 dim 1 : vector<8x128xf32>, i32 -> vector<8x128xf32>
    %35 = arith.mulf %33, %34 : vector<8x128xf32>
    %36 = math.tanh %35 : vector<8x128xf32>
    %37 = arith.mulf %32, %36 : vector<8x128xf32>
    %38 = vector.extract_strided_slice %5 {offsets = [8, 0], sizes = [8, 128], strides = [1, 1]} : vector<64x128xf32> to vector<8x128xf32>
    %cst_15 = arith.constant dense<0.000000e+00> : vector<8x128xf32>
    %39 = tpu.matmul %37, %6, %cst_15 {dimension_numbers = #tpu.dot_dimension_numbers<[1], [0], [0], [1], [0, 0, 1, 1], [], []>} : vector<8x128xf32>, vector<128x128xf32>, vector<8x128xf32> -> vector<8x128xf32>
    %40 = arith.addf %38, %39 : vector<8x128xf32>
    %cst_16 = arith.constant 5.000000e-01 : f32
    %41 = vector.broadcast %cst_16 : f32 to vector<8x128xf32>
    %42 = arith.mulf %41, %40 : vector<8x128xf32>
    %43 = arith.select %12, %40, %42 : vector<8x128xi1>, vector<8x128xf32>
    %44 = math.tanh %43 : vector<8x128xf32>
    %cst_17 = arith.constant 5.000000e-01 : f32
    %45 = vector.broadcast %cst_17 : f32 to vector<8x128xf32>
    %46 = arith.mulf %45, %44 : vector<8x128xf32>
    %cst_18 = arith.constant 5.000000e-01 : f32
    %47 = vector.broadcast %cst_18 : f32 to vector<8x128xf32>
    %48 = arith.addf %47, %46 : vector<8x128xf32>
    %49 = arith.select %12, %44, %48 : vector<8x128xi1>, vector<8x128xf32>
    %c64_i32_19 = arith.constant 64 : i32
    %50 = tpu.dynamic_rotate %49 by %c64_i32_19 dim 1 : vector<8x128xf32>, i32 -> vector<8x128xf32>
    %c32_i32_20 = arith.constant 32 : i32
    %51 = tpu.dynamic_rotate %49 by %c32_i32_20 dim 1 : vector<8x128xf32>, i32 -> vector<8x128xf32>
    %c96_i32_21 = arith.constant 96 : i32
    %52 = tpu.dynamic_rotate %49 by %c96_i32_21 dim 1 : vector<8x128xf32>, i32 -> vector<8x128xf32>
    %53 = arith.mulf %51, %52 : vector<8x128xf32>
    %54 = arith.mulf %49, %35 : vector<8x128xf32>
    %55 = arith.addf %54, %53 : vector<8x128xf32>
    %56 = math.tanh %55 : vector<8x128xf32>
    %57 = arith.mulf %50, %56 : vector<8x128xf32>
    %58 = vector.extract_strided_slice %5 {offsets = [16, 0], sizes = [8, 128], strides = [1, 1]} : vector<64x128xf32> to vector<8x128xf32>
    %cst_22 = arith.constant dense<0.000000e+00> : vector<8x128xf32>
    %59 = tpu.matmul %57, %6, %cst_22 {dimension_numbers = #tpu.dot_dimension_numbers<[1], [0], [0], [1], [0, 0, 1, 1], [], []>} : vector<8x128xf32>, vector<128x128xf32>, vector<8x128xf32> -> vector<8x128xf32>
    %60 = arith.addf %58, %59 : vector<8x128xf32>
    %cst_23 = arith.constant 5.000000e-01 : f32
    %61 = vector.broadcast %cst_23 : f32 to vector<8x128xf32>
    %62 = arith.mulf %61, %60 : vector<8x128xf32>
    %63 = arith.select %12, %60, %62 : vector<8x128xi1>, vector<8x128xf32>
    %64 = math.tanh %63 : vector<8x128xf32>
    %cst_24 = arith.constant 5.000000e-01 : f32
    %65 = vector.broadcast %cst_24 : f32 to vector<8x128xf32>
    %66 = arith.mulf %65, %64 : vector<8x128xf32>
    %cst_25 = arith.constant 5.000000e-01 : f32
    %67 = vector.broadcast %cst_25 : f32 to vector<8x128xf32>
    %68 = arith.addf %67, %66 : vector<8x128xf32>
    %69 = arith.select %12, %64, %68 : vector<8x128xi1>, vector<8x128xf32>
    %c64_i32_26 = arith.constant 64 : i32
    %70 = tpu.dynamic_rotate %69 by %c64_i32_26 dim 1 : vector<8x128xf32>, i32 -> vector<8x128xf32>
    %c32_i32_27 = arith.constant 32 : i32
    %71 = tpu.dynamic_rotate %69 by %c32_i32_27 dim 1 : vector<8x128xf32>, i32 -> vector<8x128xf32>
    %c96_i32_28 = arith.constant 96 : i32
    %72 = tpu.dynamic_rotate %69 by %c96_i32_28 dim 1 : vector<8x128xf32>, i32 -> vector<8x128xf32>
    %73 = arith.mulf %71, %72 : vector<8x128xf32>
    %74 = arith.mulf %69, %55 : vector<8x128xf32>
    %75 = arith.addf %74, %73 : vector<8x128xf32>
    %76 = math.tanh %75 : vector<8x128xf32>
    %77 = arith.mulf %70, %76 : vector<8x128xf32>
    %78 = vector.extract_strided_slice %5 {offsets = [24, 0], sizes = [8, 128], strides = [1, 1]} : vector<64x128xf32> to vector<8x128xf32>
    %cst_29 = arith.constant dense<0.000000e+00> : vector<8x128xf32>
    %79 = tpu.matmul %77, %6, %cst_29 {dimension_numbers = #tpu.dot_dimension_numbers<[1], [0], [0], [1], [0, 0, 1, 1], [], []>} : vector<8x128xf32>, vector<128x128xf32>, vector<8x128xf32> -> vector<8x128xf32>
    %80 = arith.addf %78, %79 : vector<8x128xf32>
    %cst_30 = arith.constant 5.000000e-01 : f32
    %81 = vector.broadcast %cst_30 : f32 to vector<8x128xf32>
    %82 = arith.mulf %81, %80 : vector<8x128xf32>
    %83 = arith.select %12, %80, %82 : vector<8x128xi1>, vector<8x128xf32>
    %84 = math.tanh %83 : vector<8x128xf32>
    %cst_31 = arith.constant 5.000000e-01 : f32
    %85 = vector.broadcast %cst_31 : f32 to vector<8x128xf32>
    %86 = arith.mulf %85, %84 : vector<8x128xf32>
    %cst_32 = arith.constant 5.000000e-01 : f32
    %87 = vector.broadcast %cst_32 : f32 to vector<8x128xf32>
    %88 = arith.addf %87, %86 : vector<8x128xf32>
    %89 = arith.select %12, %84, %88 : vector<8x128xi1>, vector<8x128xf32>
    %c64_i32_33 = arith.constant 64 : i32
    %90 = tpu.dynamic_rotate %89 by %c64_i32_33 dim 1 : vector<8x128xf32>, i32 -> vector<8x128xf32>
    %c32_i32_34 = arith.constant 32 : i32
    %91 = tpu.dynamic_rotate %89 by %c32_i32_34 dim 1 : vector<8x128xf32>, i32 -> vector<8x128xf32>
    %c96_i32_35 = arith.constant 96 : i32
    %92 = tpu.dynamic_rotate %89 by %c96_i32_35 dim 1 : vector<8x128xf32>, i32 -> vector<8x128xf32>
    %93 = arith.mulf %91, %92 : vector<8x128xf32>
    %94 = arith.mulf %89, %75 : vector<8x128xf32>
    %95 = arith.addf %94, %93 : vector<8x128xf32>
    %96 = math.tanh %95 : vector<8x128xf32>
    %97 = arith.mulf %90, %96 : vector<8x128xf32>
    %98 = vector.extract_strided_slice %5 {offsets = [32, 0], sizes = [8, 128], strides = [1, 1]} : vector<64x128xf32> to vector<8x128xf32>
    %cst_36 = arith.constant dense<0.000000e+00> : vector<8x128xf32>
    %99 = tpu.matmul %97, %6, %cst_36 {dimension_numbers = #tpu.dot_dimension_numbers<[1], [0], [0], [1], [0, 0, 1, 1], [], []>} : vector<8x128xf32>, vector<128x128xf32>, vector<8x128xf32> -> vector<8x128xf32>
    %100 = arith.addf %98, %99 : vector<8x128xf32>
    %cst_37 = arith.constant 5.000000e-01 : f32
    %101 = vector.broadcast %cst_37 : f32 to vector<8x128xf32>
    %102 = arith.mulf %101, %100 : vector<8x128xf32>
    %103 = arith.select %12, %100, %102 : vector<8x128xi1>, vector<8x128xf32>
    %104 = math.tanh %103 : vector<8x128xf32>
    %cst_38 = arith.constant 5.000000e-01 : f32
    %105 = vector.broadcast %cst_38 : f32 to vector<8x128xf32>
    %106 = arith.mulf %105, %104 : vector<8x128xf32>
    %cst_39 = arith.constant 5.000000e-01 : f32
    %107 = vector.broadcast %cst_39 : f32 to vector<8x128xf32>
    %108 = arith.addf %107, %106 : vector<8x128xf32>
    %109 = arith.select %12, %104, %108 : vector<8x128xi1>, vector<8x128xf32>
    %c64_i32_40 = arith.constant 64 : i32
    %110 = tpu.dynamic_rotate %109 by %c64_i32_40 dim 1 : vector<8x128xf32>, i32 -> vector<8x128xf32>
    %c32_i32_41 = arith.constant 32 : i32
    %111 = tpu.dynamic_rotate %109 by %c32_i32_41 dim 1 : vector<8x128xf32>, i32 -> vector<8x128xf32>
    %c96_i32_42 = arith.constant 96 : i32
    %112 = tpu.dynamic_rotate %109 by %c96_i32_42 dim 1 : vector<8x128xf32>, i32 -> vector<8x128xf32>
    %113 = arith.mulf %111, %112 : vector<8x128xf32>
    %114 = arith.mulf %109, %95 : vector<8x128xf32>
    %115 = arith.addf %114, %113 : vector<8x128xf32>
    %116 = math.tanh %115 : vector<8x128xf32>
    %117 = arith.mulf %110, %116 : vector<8x128xf32>
    %118 = vector.extract_strided_slice %5 {offsets = [40, 0], sizes = [8, 128], strides = [1, 1]} : vector<64x128xf32> to vector<8x128xf32>
    %cst_43 = arith.constant dense<0.000000e+00> : vector<8x128xf32>
    %119 = tpu.matmul %117, %6, %cst_43 {dimension_numbers = #tpu.dot_dimension_numbers<[1], [0], [0], [1], [0, 0, 1, 1], [], []>} : vector<8x128xf32>, vector<128x128xf32>, vector<8x128xf32> -> vector<8x128xf32>
    %120 = arith.addf %118, %119 : vector<8x128xf32>
    %cst_44 = arith.constant 5.000000e-01 : f32
    %121 = vector.broadcast %cst_44 : f32 to vector<8x128xf32>
    %122 = arith.mulf %121, %120 : vector<8x128xf32>
    %123 = arith.select %12, %120, %122 : vector<8x128xi1>, vector<8x128xf32>
    %124 = math.tanh %123 : vector<8x128xf32>
    %cst_45 = arith.constant 5.000000e-01 : f32
    %125 = vector.broadcast %cst_45 : f32 to vector<8x128xf32>
    %126 = arith.mulf %125, %124 : vector<8x128xf32>
    %cst_46 = arith.constant 5.000000e-01 : f32
    %127 = vector.broadcast %cst_46 : f32 to vector<8x128xf32>
    %128 = arith.addf %127, %126 : vector<8x128xf32>
    %129 = arith.select %12, %124, %128 : vector<8x128xi1>, vector<8x128xf32>
    %c64_i32_47 = arith.constant 64 : i32
    %130 = tpu.dynamic_rotate %129 by %c64_i32_47 dim 1 : vector<8x128xf32>, i32 -> vector<8x128xf32>
    %c32_i32_48 = arith.constant 32 : i32
    %131 = tpu.dynamic_rotate %129 by %c32_i32_48 dim 1 : vector<8x128xf32>, i32 -> vector<8x128xf32>
    %c96_i32_49 = arith.constant 96 : i32
    %132 = tpu.dynamic_rotate %129 by %c96_i32_49 dim 1 : vector<8x128xf32>, i32 -> vector<8x128xf32>
    %133 = arith.mulf %131, %132 : vector<8x128xf32>
    %134 = arith.mulf %129, %115 : vector<8x128xf32>
    %135 = arith.addf %134, %133 : vector<8x128xf32>
    %136 = math.tanh %135 : vector<8x128xf32>
    %137 = arith.mulf %130, %136 : vector<8x128xf32>
    %138 = vector.extract_strided_slice %5 {offsets = [48, 0], sizes = [8, 128], strides = [1, 1]} : vector<64x128xf32> to vector<8x128xf32>
    %cst_50 = arith.constant dense<0.000000e+00> : vector<8x128xf32>
    %139 = tpu.matmul %137, %6, %cst_50 {dimension_numbers = #tpu.dot_dimension_numbers<[1], [0], [0], [1], [0, 0, 1, 1], [], []>} : vector<8x128xf32>, vector<128x128xf32>, vector<8x128xf32> -> vector<8x128xf32>
    %140 = arith.addf %138, %139 : vector<8x128xf32>
    %cst_51 = arith.constant 5.000000e-01 : f32
    %141 = vector.broadcast %cst_51 : f32 to vector<8x128xf32>
    %142 = arith.mulf %141, %140 : vector<8x128xf32>
    %143 = arith.select %12, %140, %142 : vector<8x128xi1>, vector<8x128xf32>
    %144 = math.tanh %143 : vector<8x128xf32>
    %cst_52 = arith.constant 5.000000e-01 : f32
    %145 = vector.broadcast %cst_52 : f32 to vector<8x128xf32>
    %146 = arith.mulf %145, %144 : vector<8x128xf32>
    %cst_53 = arith.constant 5.000000e-01 : f32
    %147 = vector.broadcast %cst_53 : f32 to vector<8x128xf32>
    %148 = arith.addf %147, %146 : vector<8x128xf32>
    %149 = arith.select %12, %144, %148 : vector<8x128xi1>, vector<8x128xf32>
    %c64_i32_54 = arith.constant 64 : i32
    %150 = tpu.dynamic_rotate %149 by %c64_i32_54 dim 1 : vector<8x128xf32>, i32 -> vector<8x128xf32>
    %c32_i32_55 = arith.constant 32 : i32
    %151 = tpu.dynamic_rotate %149 by %c32_i32_55 dim 1 : vector<8x128xf32>, i32 -> vector<8x128xf32>
    %c96_i32_56 = arith.constant 96 : i32
    %152 = tpu.dynamic_rotate %149 by %c96_i32_56 dim 1 : vector<8x128xf32>, i32 -> vector<8x128xf32>
    %153 = arith.mulf %151, %152 : vector<8x128xf32>
    %154 = arith.mulf %149, %135 : vector<8x128xf32>
    %155 = arith.addf %154, %153 : vector<8x128xf32>
    %156 = math.tanh %155 : vector<8x128xf32>
    %157 = arith.mulf %150, %156 : vector<8x128xf32>
    %158 = vector.extract_strided_slice %5 {offsets = [56, 0], sizes = [8, 128], strides = [1, 1]} : vector<64x128xf32> to vector<8x128xf32>
    %cst_57 = arith.constant dense<0.000000e+00> : vector<8x128xf32>
    %159 = tpu.matmul %157, %6, %cst_57 {dimension_numbers = #tpu.dot_dimension_numbers<[1], [0], [0], [1], [0, 0, 1, 1], [], []>} : vector<8x128xf32>, vector<128x128xf32>, vector<8x128xf32> -> vector<8x128xf32>
    %160 = arith.addf %158, %159 : vector<8x128xf32>
    %cst_58 = arith.constant 5.000000e-01 : f32
    %161 = vector.broadcast %cst_58 : f32 to vector<8x128xf32>
    %162 = arith.mulf %161, %160 : vector<8x128xf32>
    %163 = arith.select %12, %160, %162 : vector<8x128xi1>, vector<8x128xf32>
    %164 = math.tanh %163 : vector<8x128xf32>
    %cst_59 = arith.constant 5.000000e-01 : f32
    %165 = vector.broadcast %cst_59 : f32 to vector<8x128xf32>
    %166 = arith.mulf %165, %164 : vector<8x128xf32>
    %cst_60 = arith.constant 5.000000e-01 : f32
    %167 = vector.broadcast %cst_60 : f32 to vector<8x128xf32>
    %168 = arith.addf %167, %166 : vector<8x128xf32>
    %169 = arith.select %12, %164, %168 : vector<8x128xi1>, vector<8x128xf32>
    %c64_i32_61 = arith.constant 64 : i32
    %170 = tpu.dynamic_rotate %169 by %c64_i32_61 dim 1 : vector<8x128xf32>, i32 -> vector<8x128xf32>
    %c32_i32_62 = arith.constant 32 : i32
    %171 = tpu.dynamic_rotate %169 by %c32_i32_62 dim 1 : vector<8x128xf32>, i32 -> vector<8x128xf32>
    %c96_i32_63 = arith.constant 96 : i32
    %172 = tpu.dynamic_rotate %169 by %c96_i32_63 dim 1 : vector<8x128xf32>, i32 -> vector<8x128xf32>
    %173 = arith.mulf %171, %172 : vector<8x128xf32>
    %174 = arith.mulf %169, %155 : vector<8x128xf32>
    %175 = arith.addf %174, %173 : vector<8x128xf32>
    %176 = math.tanh %175 : vector<8x128xf32>
    %177 = arith.mulf %170, %176 : vector<8x128xf32>
    %c0_64 = arith.constant 0 : index
    %c0_65 = arith.constant 0 : index
    %178 = vector.load %arg4[%c0_64, %c0_65] : memref<1x128xf32, #tpu.memory_space<vmem>>, vector<1x128xf32>
    %179 = vector.broadcast %178 : vector<1x128xf32> to vector<8x128xf32>
    %180 = arith.mulf %177, %179 : vector<8x128xf32>
    %cst_66 = arith.constant dense<0.000000e+00> : vector<8xf32>
    %181 = vector.multi_reduction <add>, %180, %cst_66 [1] : vector<8x128xf32> to vector<8xf32>
    %182 = vector.shape_cast %181 : vector<8xf32> to vector<8x1xf32>
    %cst_67 = arith.constant 0.000000e+00 : f32
    %183 = vector.shape_cast %182 : vector<8x1xf32> to vector<8x1xf32>
    %184 = vector.broadcast %183 : vector<8x1xf32> to vector<8x128xf32>
    %185 = vector.broadcast %cst_67 : f32 to vector<8x128xf32>
    %186 = arith.select %21, %184, %185 : vector<8x128xi1>, vector<8x128xf32>
    %c0_68 = arith.constant 0 : index
    %c0_69 = arith.constant 0 : index
    %187 = vector.load %arg5[%c0_68, %c0_69] : memref<1x128xf32, #tpu.memory_space<vmem>>, vector<1x128xf32>
    %188 = vector.broadcast %187 : vector<1x128xf32> to vector<8x128xf32>
    %189 = arith.addf %186, %188 : vector<8x128xf32>
    %cst_70 = arith.constant 0.000000e+00 : f32
    %190 = vector.broadcast %cst_70 : f32 to vector<8x128xf32>
    %191 = arith.select %17, %177, %190 : vector<8x128xi1>, vector<8x128xf32>
    %192 = arith.addf %189, %191 : vector<8x128xf32>
    %c64_i32_71 = arith.constant 64 : i32
    %193 = tpu.dynamic_rotate %175 by %c64_i32_71 dim 1 : vector<8x128xf32>, i32 -> vector<8x128xf32>
    %cst_72 = arith.constant 0.000000e+00 : f32
    %194 = vector.broadcast %cst_72 : f32 to vector<8x128xf32>
    %195 = arith.select %19, %193, %194 : vector<8x128xi1>, vector<8x128xf32>
    %196 = arith.addf %192, %195 : vector<8x128xf32>
    %c0_73 = arith.constant 0 : index
    %c0_74 = arith.constant 0 : index
    %197 = vector.load %arg6[%c0_73, %c0_74] : memref<8x128xf32, #tpu.memory_space<vmem>>, vector<8x128xf32>
    tpu.vector_store %arg6[%c0_73, %c0_74], %196 {strides = array<i32>} : memref<8x128xf32, #tpu.memory_space<vmem>>, vector<8x128xf32>,
    return
  }
}

</mosaic_0001>

<bundles_post_ra>
// kernel: cell_module_forward.1
= control target key start
LH: loop header
LB: loop body
LE: loop exit
PB: predicated region body
PF: predicated region fallthrough
CT: control target
= control target key end

     0   :  { %vm39_vm0 = vcmask 64512   ;;  %v1291_v3 = vmov 0.0   ;;  %v185_v9 = vlaneseq  ;;  %vm1292_vm4 = vmmov 0   ;;  %s1293_s27 = smov 64   ;;  %s1294_s28 = smov 32   ;;  %s1797_s1 = inlined_call_operand.vmem [shape: f32[8,128], index: 1, kind: input, shape index: {}]   ;;  %s1798_s0 = inlined_call_operand.vmem [shape: f32[64,8], index: 0, kind: input, shape index: {}]   ;;  %s1799_s2 = inlined_call_operand.vmem [shape: f32[128,128], index: 2, kind: input, shape index: {}]   ;;  %s1800_s3 = inlined_call_operand.vmem [shape: f32[1,128], index: 3, kind: input, shape index: {}]   ;;  %s1801_s4 = inlined_call_operand.vmem [shape: f32[1,128], index: 4, kind: input, shape index: {}]   ;;  %s1802_s5 = inlined_call_operand.vmem [shape: f32[1,128], index: 5, kind: input, shape index: {}]   ;;  %s1803_s6 = inlined_call_operand.vmem [shape: f32[8,128], index: 6, kind: output, shape index: {}]  }
   0x1   :  { %v31_v0 = vld [vmem:[%s1797_s1] sm:$0xff]  ;;  %v24_v2 = vld [vmem:[%s1798_s0 + $0x8] sm:$0xff]  ;;  %1009 = vmatprep.subr.mxu1 %v1291_v3  ;;  %v1346_v4 = vld [vmem:[%s1799_s2 + $0x78] sm:$0xff]  ;;  %1041 = vmatprep.mubr.msk.f32.mxu1 %vm1292_vm4, %v1291_v3  ;;  %s1295_s8 = smov 96  }
   0x2   :  { %v23_v1 = vld [vmem:[%s1798_s0] sm:$0xff]  ;;  %995 = vmatprep.subr.mxu0 %v31_v0  ;;  %v1351_v5 = vld [vmem:[%s1799_s2 + $0x70] sm:$0xff]  ;;  %1010 = vmatpush3.msra.mxu1 %v1346_v4  ;;  %v1360_v6 = vld [vmem:[%s1799_s2 + $0x68] sm:$0xff]  ;;  %v1389_v10 = vand.u32 127, %v185_v9 }
   0x3   :  { %997 = vmatprep.mubr.msk.f32.mxu0 %vm39_vm0, %v23_v1  ;;  %996 = vmatpush3.msra.mxu0 %v31_v0  ;;  %v1369_v7 = vld [vmem:[%s1799_s2 + $0x60] sm:$0xff]  ;;  %v1378_v8 = vld [vmem:[%s1799_s2 + $0x58] sm:$0xff]  ;;  %v1410_v18 = vld [vmem:[%s1799_s2 + $0x50] sm:$0xff] }
   0x4   :  { %998 = vmatmul.mubr.msk.f32.vlgmr.msra.gmra.mxu0 %vm39_vm0, %v24_v2  ;;  %1044 = vmatprep.subr.mxu0 %v1291_v3  ;;  %vm187_vm1 = vcmp.ge.s32.totalorder %v1389_v10, 64  ;;  %vm188_vm2 = vcmp.lt.s32.totalorder %v1389_v10, 96  ;;  %v1398_v12 = vld [vmem:[%s1800_s3] ss:$0 sm:$0xff]  ;;  %v1415_v19 = vld [vmem:[%s1799_s2 + $0x48] sm:$0xff]  ;;  %v1436_v21 = vld [vmem:[%s1799_s2 + $0x38] sm:$0xff] }
   0x5   :  { %1045 = vmatpush3.msra.mxu0 %v1346_v4  ;;  %1011 = vmatprep.subr.mxu1 %v1291_v3  ;;  %vm1401_vm3 = vmand %vm187_vm1, %vm188_vm2  ;;  %v1428_v20 = vld [vmem:[%s1799_s2 + $0x40] sm:$0xff]  ;;  %v1441_v22 = vld [vmem:[%s1799_s2 + $0x30] sm:$0xff]  ;;  %vm190_vm5 = vcmp.ge.s32.totalorder %v1389_v10, 32  ;;  %vm191_vm6 = vcmp.lt.s32.totalorder %v1389_v10, 64  ;;  %vm194_vm7 = vcmp.lt.s32.totalorder %v1389_v10, 1  ;;  %vm193_vm9 = vcmp.ge.s32.totalorder %v1389_v10, 96 }
   0x6   :  { %1046 = vmatprep.subr.mxu0 %v1291_v3  ;;  %1012 = vmatpush3.msra.mxu1 %v1351_v5  ;;  %v1451_v25 = vld [vmem:[%s1799_s2 + $0x28] sm:$0xff]  ;;  %v1462_v27 = vld [vmem:[%s1799_s2 + $0x20] sm:$0xff]  ;;  %v1474_v29 = vld [vmem:[%s1799_s2 + $0x18] sm:$0xff] }
   0x7   :  { %1047 = vmatpush3.msra.mxu0 %v1351_v5  ;;  %1013 = vmatprep.subr.mxu1 %v1291_v3  ;;  %v1482_v30 = vld [vmem:[%s1799_s2 + $0x10] sm:$0xff]  ;;  %v1492_v31 = vld [vmem:[%s1799_s2 + $0x8] sm:$0xff]  ;;  %v1500_v32 = vld [vmem:[%s1799_s2] sm:$0xff] }
   0x8   :  { %1048 = vmatprep.subr.mxu0 %v1291_v3  ;;  %1014 = vmatpush3.msra.mxu1 %v1360_v6  ;;  %v25_v45 = vld [vmem:[%s1798_s0 + $0x10] sm:$0xff]  ;;  %v26_v46 = vld [vmem:[%s1798_s0 + $0x18] sm:$0xff]  ;;  %v27_v49 = vld [vmem:[%s1798_s0 + $0x20] sm:$0xff] }
   0x9   :  { %1049 = vmatpush3.msra.mxu0 %v1360_v6  ;;  %1015 = vmatprep.subr.mxu1 %v1291_v3  ;;  %v28_v50 = vld [vmem:[%s1798_s0 + $0x28] sm:$0xff]  ;;  %v29_v53 = vld [vmem:[%s1798_s0 + $0x30] sm:$0xff]  ;;  %v30_v54 = vld [vmem:[%s1798_s0 + $0x38] sm:$0xff] }
   0xa   :  { %1050 = vmatprep.subr.mxu0 %v1291_v3  ;;  %1016 = vmatpush3.msra.mxu1 %v1369_v7  ;;  %v865_v15 = vld [vmem:[%s1801_s4] ss:$0 sm:$0xff]  ;;  %vm192_vm8 = vmand %vm190_vm5, %vm191_vm6 }
   0xb   :  { %1051 = vmatpush3.msra.mxu0 %v1369_v7  ;;  %1017 = vmatprep.subr.mxu1 %v1291_v3 }
   0xc   :  { %1052 = vmatprep.subr.mxu0 %v1291_v3  ;;  %1018 = vmatpush3.msra.mxu1 %v1378_v8 }
   0xd   :  { %1053 = vmatpush3.msra.mxu0 %v1378_v8  ;;  %1019 = vmatprep.subr.mxu1 %v1291_v3 }
   0xe   :  { %1054 = vmatprep.subr.mxu0 %v1291_v3  ;;  %1020 = vmatpush3.msra.mxu1 %v1410_v18 }
   0xf   :  { %1055 = vmatpush3.msra.mxu0 %v1410_v18  ;;  %1021 = vmatprep.subr.mxu1 %v1291_v3 }
  0x10   :  { %1056 = vmatprep.subr.mxu0 %v1291_v3  ;;  %1022 = vmatpush3.msra.mxu1 %v1415_v19 }
  0x11   :  { %1057 = vmatpush3.msra.mxu0 %v1415_v19  ;;  %1023 = vmatprep.subr.mxu1 %v1291_v3 }
  0x12   :  { %1058 = vmatprep.subr.mxu0 %v1291_v3  ;;  %1024 = vmatpush3.msra.mxu1 %v1428_v20 }
  0x13   :  { %1059 = vmatpush3.msra.mxu0 %v1428_v20  ;;  %1025 = vmatprep.subr.mxu1 %v1291_v3 }
  0x14   :  { %1060 = vmatprep.subr.mxu0 %v1291_v3  ;;  %1026 = vmatpush3.msra.mxu1 %v1436_v21 }
  0x15   :  { %1027 = vmatprep.subr.mxu1 %v1291_v3  ;;  %1061 = vmatpush3.msra.mxu0 %v1436_v21 }
  0x16   :  { %1028 = vmatpush3.msra.mxu1 %v1441_v22  ;;  %1062 = vmatprep.subr.mxu0 %v1291_v3 }
  0x17   :  { %1029 = vmatprep.subr.mxu1 %v1291_v3  ;;  %1063 = vmatpush3.msra.mxu0 %v1441_v22 }
  0x18   :  { %1030 = vmatpush3.msra.mxu1 %v1451_v25  ;;  %1064 = vmatprep.subr.mxu0 %v1291_v3 }
  0x19   :  { %1031 = vmatprep.subr.mxu1 %v1291_v3  ;;  %1065 = vmatpush3.msra.mxu0 %v1451_v25 }
  0x1a   :  { %1032 = vmatpush3.msra.mxu1 %v1462_v27  ;;  %1066 = vmatprep.subr.mxu0 %v1291_v3 }
  0x1b   :  { %1033 = vmatprep.subr.mxu1 %v1291_v3  ;;  %1067 = vmatpush3.msra.mxu0 %v1462_v27 }
  0x1c   :  { %1034 = vmatpush3.msra.mxu1 %v1474_v29  ;;  %1068 = vmatprep.subr.mxu0 %v1291_v3 }
  0x1d   :  { %1035 = vmatprep.subr.mxu1 %v1291_v3  ;;  %1069 = vmatpush3.msra.mxu0 %v1474_v29 }
  0x1e   :  { %1036 = vmatpush3.msra.mxu1 %v1482_v30  ;;  %1070 = vmatprep.subr.mxu0 %v1291_v3 }
  0x1f   :  { %1037 = vmatprep.subr.mxu1 %v1291_v3  ;;  %1071 = vmatpush3.msra.mxu0 %v1482_v30 }
  0x20   :  { %1038 = vmatpush3.msra.mxu1 %v1492_v31  ;;  %1072 = vmatprep.subr.mxu0 %v1291_v3 }
  0x21   :  { %1039 = vmatprep.subr.mxu1 %v1291_v3  ;;  %1073 = vmatpush3.msra.mxu0 %v1492_v31 }
  0x22   :  { %1040 = vmatpush3.msra.mxu1 %v1500_v32  ;;  %1074 = vmatprep.subr.mxu0 %v1291_v3 }
  0x23   :  { %1079 = vmatprep.subr.mxu1 %v1291_v3  ;;  %1075 = vmatpush3.msra.mxu0 %v1500_v32 }
  0x24   :  { %1114 = vmatprep.subr.mxu0 %v1291_v3  ;;  %1000 = vmatprep.mubr.msk.f32.mxu0 %vm39_vm0, %v25_v45 }
  0x25   :  { %1001 = vmatmul.mubr.msk.f32.gmra.mxu0 %vm39_vm0, %v26_v46 }
  0x26   :  { %1003 = vmatprep.mubr.msk.f32.mxu0 %vm39_vm0, %v27_v49 }
  0x29   :  { %1004 = vmatmul.mubr.msk.f32.gmra.mxu0 %vm39_vm0, %v28_v50 }
  0x2a   :  { %1006 = vmatprep.mubr.msk.f32.mxu0 %vm39_vm0, %v29_v53 }
  0x2d   :  { %1007 = vmatmul.mubr.msk.f32.gmra.mxu0 %vm39_vm0, %v30_v54 }
  0x2e   :  { %1076 = vmatprep.mubr.msk.f32.mxu0 %vm1292_vm4, %v1291_v3 }
  0xc4   :  { %v1391_v11 = vpop.f32.mrf.mxu0 }
  0xc5   :  { %v136_v39 = vadd.f32 %v1391_v11, %v1398_v12 }
  0xc6   :  { %v130_v13 = vpop.f32.mrf.mxu0 }
  0xc7   :  { %v131_v14 = vadd.f32 %v1398_v12, %v130_v13 }
  0xc9   :  { %v195_v16 = vmul.f32 0.5, %v131_v14 }
  0xcb   :  { %v196_v17 = vsel %vm1401_vm3, %v131_v14, %v195_v16 }
  0xcc   :  { %1259 = vtanh.f32 %v196_v17 }
  0xd9   :  { %v1260_v23 = vpop.eup %1259 }
  0xda   :  { %v198_v24 = vmul.f32 0.5, %v1260_v23 }
  0xdc   :  { %v199_v26 = vadd.f32 0.5, %v198_v24 }
  0xde   :  { %v200_v28 = vsel %vm1401_vm3, %v1260_v23, %v199_v26 }
  0xdf   :  { %201 = vrot.lane.b32.xlu1 %v200_v28, %s1293_s27  ;;  %203 = vrot.lane.b32.xlu0 %v200_v28, %s1294_s28 }
  0xe3   :  { %205 = vrot.lane.b32.xlu0 %v200_v28, %s1295_s8 }
  0xe5   :  { %v1620_v63 = vpop.f32.mrf.mxu0 }
  0xe7   :  { %v140_v0 = vpop.f32.mrf.mxu0 }
  0xe8   :  { %v141_v13 = vadd.f32 %v1398_v12, %v140_v0 }
  0xe9   :  { %v1622_v1 = vpop.f32.mrf.mxu0 }
  0xeb   :  { %v1624_v2 = vpop.f32.mrf.mxu0 }
  0xed   :  { %v1626_v9 = vpop.f32.mrf.mxu0 }
  0xef   :  { %v1628_v11 = vpop.f32.mrf.mxu0 }
 0x151   :  { %v204_v33 = vpop.permute.xlu0 %203  ;;  %v202_v37 = vpop.permute.xlu1 %201 }
 0x155   :  { %v206_v34 = vpop.permute.xlu0 %205 }
 0x156   :  { %v1513_v35 = vmul.f32 %v206_v34, %v204_v33 }
 0x158   :  { %1261 = vtanh.f32 %v1513_v35 }
 0x165   :  { %v1262_v36 = vpop.eup %1261 }
 0x166   :  { %v209_v38 = vmul.f32 %v1262_v36, %v202_v37 }
 0x168   :  { %1042 = vmatmul.mubr.f32.vlgmr.msra.gmra.mxu1 %v209_v38 }
 0x169   :  { %1080 = vmatpush3.msra.mxu1 %v1346_v4  ;;  %1111 = vmatprep.mubr.msk.f32.mxu1 %vm1292_vm4, %v1291_v3 }
 0x16a   :  { %1081 = vmatprep.subr.mxu1 %v1291_v3 }
 0x16b   :  { %1082 = vmatpush3.msra.mxu1 %v1351_v5 }
 0x16c   :  { %1083 = vmatprep.subr.mxu1 %v1291_v3 }
 0x16d   :  { %1084 = vmatpush3.msra.mxu1 %v1360_v6 }
 0x16e   :  { %1085 = vmatprep.subr.mxu1 %v1291_v3 }
 0x16f   :  { %1086 = vmatpush3.msra.mxu1 %v1369_v7 }
 0x170   :  { %1087 = vmatprep.subr.mxu1 %v1291_v3 }
 0x171   :  { %1088 = vmatpush3.msra.mxu1 %v1378_v8 }
 0x172   :  { %1089 = vmatprep.subr.mxu1 %v1291_v3 }
 0x173   :  { %1090 = vmatpush3.msra.mxu1 %v1410_v18 }
 0x174   :  { %1091 = vmatprep.subr.mxu1 %v1291_v3 }
 0x175   :  { %1092 = vmatpush3.msra.mxu1 %v1415_v19 }
 0x176   :  { %1093 = vmatprep.subr.mxu1 %v1291_v3 }
 0x177   :  { %1094 = vmatpush3.msra.mxu1 %v1428_v20 }
 0x178   :  { %1095 = vmatprep.subr.mxu1 %v1291_v3 }
 0x179   :  { %1096 = vmatpush3.msra.mxu1 %v1436_v21 }
 0x17a   :  { %1097 = vmatprep.subr.mxu1 %v1291_v3 }
 0x17b   :  { %1098 = vmatpush3.msra.mxu1 %v1441_v22 }
 0x17c   :  { %1099 = vmatprep.subr.mxu1 %v1291_v3 }
 0x17d   :  { %1100 = vmatpush3.msra.mxu1 %v1451_v25 }
 0x17e   :  { %1101 = vmatprep.subr.mxu1 %v1291_v3 }
 0x17f   :  { %1102 = vmatpush3.msra.mxu1 %v1462_v27 }
 0x180   :  { %1103 = vmatprep.subr.mxu1 %v1291_v3 }
 0x181   :  { %1104 = vmatpush3.msra.mxu1 %v1474_v29 }
 0x182   :  { %1105 = vmatprep.subr.mxu1 %v1291_v3 }
 0x183   :  { %1106 = vmatpush3.msra.mxu1 %v1482_v30 }
 0x184   :  { %1107 = vmatprep.subr.mxu1 %v1291_v3 }
 0x185   :  { %1108 = vmatpush3.msra.mxu1 %v1492_v31 }
 0x186   :  { %1109 = vmatprep.subr.mxu1 %v1291_v3 }
 0x187   :  { %1110 = vmatpush3.msra.mxu1 %v1500_v32 }
 0x188   :  { %1149 = vmatprep.subr.mxu1 %v1291_v3 }
 0x228   :  { %v276_v40 = vpop.f32.mrf.mxu1 }
 0x229   :  { %v280_v41 = vadd.f32 %v276_v40, %v136_v39 }
 0x22a   :  { %v1043_v42 = vpop.f32.mrf.mxu1 }
 0x22b   :  { %v281_v43 = vmul.f32 0.5, %v280_v41 }
 0x22d   :  { %v282_v44 = vsel %vm1401_vm3, %v280_v41, %v281_v43  ;;  %v146_v43 = vadd.f32 %v1620_v63, %v1398_v12 }
 0x22e   :  { %1263 = vtanh.f32 %v282_v44 }
 0x23b   :  { %v1264_v47 = vpop.eup %1263 }
 0x23c   :  { %v284_v48 = vmul.f32 0.5, %v1264_v47 }
 0x23e   :  { %v285_v51 = vadd.f32 0.5, %v284_v48 }
 0x240   :  { %v286_v52 = vsel %vm1401_vm3, %v1264_v47, %v285_v51 }
 0x241   :  { %291 = vrot.lane.b32.xlu0 %v286_v52, %s1295_s8  ;;  %289 = vrot.lane.b32.xlu1 %v286_v52, %s1294_s28  ;;  %v294_v58 = vmul.f32 %v286_v52, %v1513_v35 }
 0x245   :  { %287 = vrot.lane.b32.xlu1 %v286_v52, %s1293_s27 }
 0x2b3   :  { %v292_v55 = vpop.permute.xlu0 %291  ;;  %v290_v56 = vpop.permute.xlu1 %289 }
 0x2b4   :  { %v293_v57 = vmul.f32 %v292_v55, %v290_v56 }
 0x2b6   :  { %v295_v59 = vadd.f32 %v294_v58, %v293_v57 }
 0x2b7   :  { %v288_v61 = vpop.permute.xlu1 %287 }
 0x2b8   :  { %1265 = vtanh.f32 %v295_v59 }
 0x2c5   :  { %v1266_v60 = vpop.eup %1265 }
 0x2c6   :  { %v297_v62 = vmul.f32 %v1266_v60, %v288_v61  ;;  %v151_v61 = vadd.f32 %v1398_v12, %v1624_v2 }
 0x2c8   :  { %1077 = vmatmul.mubr.f32.vlgmr.msra.gmra.mxu0 %v297_v62 }
 0x2c9   :  { %1115 = vmatpush3.msra.mxu0 %v1346_v4  ;;  %1146 = vmatprep.mubr.msk.f32.mxu0 %vm1292_vm4, %v1291_v3 }
 0x2ca   :  { %1116 = vmatprep.subr.mxu0 %v1291_v3 }
 0x2cb   :  { %1117 = vmatpush3.msra.mxu0 %v1351_v5 }
 0x2cc   :  { %1118 = vmatprep.subr.mxu0 %v1291_v3 }
 0x2cd   :  { %1119 = vmatpush3.msra.mxu0 %v1360_v6 }
 0x2ce   :  { %1120 = vmatprep.subr.mxu0 %v1291_v3 }
 0x2cf   :  { %1121 = vmatpush3.msra.mxu0 %v1369_v7 }
 0x2d0   :  { %1122 = vmatprep.subr.mxu0 %v1291_v3 }
 0x2d1   :  { %1123 = vmatpush3.msra.mxu0 %v1378_v8 }
 0x2d2   :  { %1124 = vmatprep.subr.mxu0 %v1291_v3 }
 0x2d3   :  { %1125 = vmatpush3.msra.mxu0 %v1410_v18 }
 0x2d4   :  { %1126 = vmatprep.subr.mxu0 %v1291_v3 }
 0x2d5   :  { %1127 = vmatpush3.msra.mxu0 %v1415_v19 }
 0x2d6   :  { %1128 = vmatprep.subr.mxu0 %v1291_v3 }
 0x2d7   :  { %1129 = vmatpush3.msra.mxu0 %v1428_v20 }
 0x2d8   :  { %1130 = vmatprep.subr.mxu0 %v1291_v3 }
 0x2d9   :  { %1131 = vmatpush3.msra.mxu0 %v1436_v21 }
 0x2da   :  { %1132 = vmatprep.subr.mxu0 %v1291_v3 }
 0x2db   :  { %1133 = vmatpush3.msra.mxu0 %v1441_v22 }
 0x2dc   :  { %1134 = vmatprep.subr.mxu0 %v1291_v3 }
 0x2dd   :  { %1135 = vmatpush3.msra.mxu0 %v1451_v25 }
 0x2de   :  { %1136 = vmatprep.subr.mxu0 %v1291_v3 }
 0x2df   :  { %1137 = vmatpush3.msra.mxu0 %v1462_v27 }
 0x2e0   :  { %1138 = vmatprep.subr.mxu0 %v1291_v3 }
 0x2e1   :  { %1139 = vmatpush3.msra.mxu0 %v1474_v29 }
 0x2e2   :  { %1140 = vmatprep.subr.mxu0 %v1291_v3 }
 0x2e3   :  { %1141 = vmatpush3.msra.mxu0 %v1482_v30 }
 0x2e4   :  { %1142 = vmatprep.subr.mxu0 %v1291_v3 }
 0x2e5   :  { %1143 = vmatpush3.msra.mxu0 %v1492_v31 }
 0x2e6   :  { %1144 = vmatprep.subr.mxu0 %v1291_v3 }
 0x2e7   :  { %1145 = vmatpush3.msra.mxu0 %v1500_v32 }
 0x2e8   :  { %1184 = vmatprep.subr.mxu0 %v1291_v3 }
 0x388   :  { %v364_v14 = vpop.f32.mrf.mxu0 }
 0x389   :  { %v368_v16 = vadd.f32 %v364_v14, %v141_v13 }
 0x38a   :  { %v1078_v17 = vpop.f32.mrf.mxu0 }
 0x38b   :  { %v369_v23 = vmul.f32 0.5, %v368_v16 }
 0x38d   :  { %v370_v24 = vsel %vm1401_vm3, %v368_v16, %v369_v23 }
 0x38e   :  { %1267 = vtanh.f32 %v370_v24 }
 0x39b   :  { %v1268_v26 = vpop.eup %1267 }
 0x39c   :  { %v372_v28 = vmul.f32 0.5, %v1268_v26 }
 0x39e   :  { %v373_v33 = vadd.f32 0.5, %v372_v28 }
 0x3a0   :  { %v374_v34 = vsel %vm1401_vm3, %v1268_v26, %v373_v33 }
 0x3a1   :  { %379 = vrot.lane.b32.xlu1 %v374_v34, %s1295_s8  ;;  %377 = vrot.lane.b32.xlu0 %v374_v34, %s1294_s28  ;;  %v382_v38 = vmul.f32 %v374_v34, %v295_v59 }
 0x3a5   :  { %375 = vrot.lane.b32.xlu0 %v374_v34, %s1293_s27 }
 0x413   :  { %v380_v35 = vpop.permute.xlu1 %379  ;;  %v378_v36 = vpop.permute.xlu0 %377 }
 0x414   :  { %v381_v37 = vmul.f32 %v380_v35, %v378_v36 }
 0x416   :  { %v383_v39 = vadd.f32 %v382_v38, %v381_v37  ;;  %v161_v38 = vadd.f32 %v1398_v12, %v1628_v11 }
 0x417   :  { %v376_v41 = vpop.permute.xlu0 %375 }
 0x418   :  { %1269 = vtanh.f32 %v383_v39 }
 0x425   :  { %v1270_v40 = vpop.eup %1269 }
 0x426   :  { %v385_v42 = vmul.f32 %v1270_v40, %v376_v41 }
 0x428   :  { %1112 = vmatmul.mubr.f32.vlgmr.msra.gmra.mxu1 %v385_v42 }
 0x429   :  { %1150 = vmatpush3.msra.mxu1 %v1346_v4  ;;  %1181 = vmatprep.mubr.msk.f32.mxu1 %vm1292_vm4, %v1291_v3 }
 0x42a   :  { %1151 = vmatprep.subr.mxu1 %v1291_v3 }
 0x42b   :  { %1152 = vmatpush3.msra.mxu1 %v1351_v5 }
 0x42c   :  { %1153 = vmatprep.subr.mxu1 %v1291_v3 }
 0x42d   :  { %1154 = vmatpush3.msra.mxu1 %v1360_v6 }
 0x42e   :  { %1155 = vmatprep.subr.mxu1 %v1291_v3 }
 0x42f   :  { %1156 = vmatpush3.msra.mxu1 %v1369_v7 }
 0x430   :  { %1157 = vmatprep.subr.mxu1 %v1291_v3 }
 0x431   :  { %1158 = vmatpush3.msra.mxu1 %v1378_v8 }
 0x432   :  { %1159 = vmatprep.subr.mxu1 %v1291_v3 }
 0x433   :  { %1160 = vmatpush3.msra.mxu1 %v1410_v18 }
 0x434   :  { %1161 = vmatprep.subr.mxu1 %v1291_v3 }
 0x435   :  { %1162 = vmatpush3.msra.mxu1 %v1415_v19 }
 0x436   :  { %1163 = vmatprep.subr.mxu1 %v1291_v3 }
 0x437   :  { %1164 = vmatpush3.msra.mxu1 %v1428_v20 }
 0x438   :  { %1165 = vmatprep.subr.mxu1 %v1291_v3 }
 0x439   :  { %1166 = vmatpush3.msra.mxu1 %v1436_v21 }
 0x43a   :  { %1167 = vmatprep.subr.mxu1 %v1291_v3 }
 0x43b   :  { %1168 = vmatpush3.msra.mxu1 %v1441_v22 }
 0x43c   :  { %1169 = vmatprep.subr.mxu1 %v1291_v3 }
 0x43d   :  { %1170 = vmatpush3.msra.mxu1 %v1451_v25 }
 0x43e   :  { %1171 = vmatprep.subr.mxu1 %v1291_v3 }
 0x43f   :  { %1172 = vmatpush3.msra.mxu1 %v1462_v27 }
 0x440   :  { %1173 = vmatprep.subr.mxu1 %v1291_v3 }
 0x441   :  { %1174 = vmatpush3.msra.mxu1 %v1474_v29 }
 0x442   :  { %1175 = vmatprep.subr.mxu1 %v1291_v3 }
 0x443   :  { %1176 = vmatpush3.msra.mxu1 %v1482_v30 }
 0x444   :  { %1177 = vmatprep.subr.mxu1 %v1291_v3 }
 0x445   :  { %1178 = vmatpush3.msra.mxu1 %v1492_v31 }
 0x446   :  { %1179 = vmatprep.subr.mxu1 %v1291_v3 }
 0x447   :  { %1180 = vmatpush3.msra.mxu1 %v1500_v32 }
 0x448   :  { %1219 = vmatprep.subr.mxu1 %v1291_v3 }
 0x4e8   :  { %v452_v44 = vpop.f32.mrf.mxu1 }
 0x4e9   :  { %v456_v45 = vadd.f32 %v452_v44, %v146_v43 }
 0x4ea   :  { %v1113_v46 = vpop.f32.mrf.mxu1 }
 0x4eb   :  { %v457_v47 = vmul.f32 0.5, %v456_v45 }
 0x4ed   :  { %v458_v48 = vsel %vm1401_vm3, %v456_v45, %v457_v47 }
 0x4ee   :  { %1271 = vtanh.f32 %v458_v48 }
 0x4fb   :  { %v1272_v49 = vpop.eup %1271 }
 0x4fc   :  { %v460_v50 = vmul.f32 0.5, %v1272_v49 }
 0x4fe   :  { %v461_v51 = vadd.f32 0.5, %v460_v50 }
 0x500   :  { %v462_v52 = vsel %vm1401_vm3, %v1272_v49, %v461_v51 }
 0x501   :  { %467 = vrot.lane.b32.xlu0 %v462_v52, %s1295_s8  ;;  %465 = vrot.lane.b32.xlu1 %v462_v52, %s1294_s28  ;;  %v470_v56 = vmul.f32 %v462_v52, %v383_v39 }
 0x505   :  { %463 = vrot.lane.b32.xlu1 %v462_v52, %s1293_s27 }
 0x573   :  { %v468_v53 = vpop.permute.xlu0 %467  ;;  %v466_v54 = vpop.permute.xlu1 %465 }
 0x574   :  { %v469_v55 = vmul.f32 %v468_v53, %v466_v54 }
 0x576   :  { %v471_v57 = vadd.f32 %v470_v56, %v469_v55  ;;  %v166_v55 = vadd.f32 %v1626_v9, %v1398_v12 }
 0x577   :  { %v464_v59 = vpop.permute.xlu1 %463 }
 0x578   :  { %1273 = vtanh.f32 %v471_v57 }
 0x585   :  { %v1274_v58 = vpop.eup %1273 }
 0x586   :  { %v473_v60 = vmul.f32 %v1274_v58, %v464_v59 }
 0x588   :  { %1147 = vmatmul.mubr.f32.vlgmr.msra.gmra.mxu0 %v473_v60 }
 0x589   :  { %1185 = vmatpush3.msra.mxu0 %v1346_v4  ;;  %1216 = vmatprep.mubr.msk.f32.mxu0 %vm1292_vm4, %v1291_v3 }
 0x58a   :  { %1186 = vmatprep.subr.mxu0 %v1291_v3 }
 0x58b   :  { %1187 = vmatpush3.msra.mxu0 %v1351_v5 }
 0x58c   :  { %1188 = vmatprep.subr.mxu0 %v1291_v3 }
 0x58d   :  { %1189 = vmatpush3.msra.mxu0 %v1360_v6 }
 0x58e   :  { %1190 = vmatprep.subr.mxu0 %v1291_v3 }
 0x58f   :  { %1191 = vmatpush3.msra.mxu0 %v1369_v7 }
 0x590   :  { %1192 = vmatprep.subr.mxu0 %v1291_v3 }
 0x591   :  { %1193 = vmatpush3.msra.mxu0 %v1378_v8 }
 0x592   :  { %1194 = vmatprep.subr.mxu0 %v1291_v3 }
 0x593   :  { %1195 = vmatpush3.msra.mxu0 %v1410_v18 }
 0x594   :  { %1196 = vmatprep.subr.mxu0 %v1291_v3 }
 0x595   :  { %1197 = vmatpush3.msra.mxu0 %v1415_v19 }
 0x596   :  { %1198 = vmatprep.subr.mxu0 %v1291_v3 }
 0x597   :  { %1199 = vmatpush3.msra.mxu0 %v1428_v20 }
 0x598   :  { %1200 = vmatprep.subr.mxu0 %v1291_v3 }
 0x599   :  { %1201 = vmatpush3.msra.mxu0 %v1436_v21 }
 0x59a   :  { %1202 = vmatprep.subr.mxu0 %v1291_v3 }
 0x59b   :  { %1203 = vmatpush3.msra.mxu0 %v1441_v22 }
 0x59c   :  { %1204 = vmatprep.subr.mxu0 %v1291_v3 }
 0x59d   :  { %1205 = vmatpush3.msra.mxu0 %v1451_v25 }
 0x59e   :  { %1206 = vmatprep.subr.mxu0 %v1291_v3 }
 0x59f   :  { %1207 = vmatpush3.msra.mxu0 %v1462_v27 }
 0x5a0   :  { %1208 = vmatprep.subr.mxu0 %v1291_v3 }
 0x5a1   :  { %1209 = vmatpush3.msra.mxu0 %v1474_v29 }
 0x5a2   :  { %1210 = vmatprep.subr.mxu0 %v1291_v3 }
 0x5a3   :  { %1211 = vmatpush3.msra.mxu0 %v1482_v30 }
 0x5a4   :  { %1212 = vmatprep.subr.mxu0 %v1291_v3 }
 0x5a5   :  { %1213 = vmatpush3.msra.mxu0 %v1492_v31 }
 0x5a6   :  { %1214 = vmatprep.subr.mxu0 %v1291_v3 }
 0x5a7   :  { %1215 = vmatpush3.msra.mxu0 %v1500_v32 }
 0x648   :  { %v540_v62 = vpop.f32.mrf.mxu0 }
 0x649   :  { %v544_v63 = vadd.f32 %v540_v62, %v151_v61 }
 0x64a   :  { %v1148_v0 = vpop.f32.mrf.mxu0 }
 0x64b   :  { %v545_v13 = vmul.f32 0.5, %v544_v63 }
 0x64d   :  { %v546_v14 = vsel %vm1401_vm3, %v544_v63, %v545_v13 }
 0x64e   :  { %1275 = vtanh.f32 %v546_v14 }
 0x65b   :  { %v1276_v16 = vpop.eup %1275 }
 0x65c   :  { %v548_v17 = vmul.f32 0.5, %v1276_v16 }
 0x65e   :  { %v549_v23 = vadd.f32 0.5, %v548_v17 }
 0x660   :  { %v550_v24 = vsel %vm1401_vm3, %v1276_v16, %v549_v23 }
 0x661   :  { %555 = vrot.lane.b32.xlu1 %v550_v24, %s1295_s8  ;;  %553 = vrot.lane.b32.xlu0 %v550_v24, %s1294_s28  ;;  %v558_v33 = vmul.f32 %v550_v24, %v471_v57 }
 0x665   :  { %551 = vrot.lane.b32.xlu0 %v550_v24, %s1293_s27 }
 0x6d3   :  { %v556_v2 = vpop.permute.xlu1 %555  ;;  %v554_v26 = vpop.permute.xlu0 %553 }
 0x6d4   :  { %v557_v28 = vmul.f32 %v556_v2, %v554_v26  ;;  %v866_v26 = vld [vmem:[%s1802_s5] ss:$0 sm:$0xff] }
 0x6d6   :  { %v559_v34 = vadd.f32 %v558_v33, %v557_v28 }
 0x6d7   :  { %v552_v36 = vpop.permute.xlu0 %551 }
 0x6d8   :  { %1277 = vtanh.f32 %v559_v34 }
 0x6e5   :  { %v1278_v35 = vpop.eup %1277 }
 0x6e6   :  { %v561_v37 = vmul.f32 %v1278_v35, %v552_v36 }
 0x6e8   :  { %1182 = vmatmul.mubr.f32.vlgmr.msra.gmra.mxu1 %v561_v37 }
 0x6e9   :  { %1220 = vmatpush3.msra.mxu1 %v1346_v4  ;;  %1251 = vmatprep.mubr.msk.f32.mxu1 %vm1292_vm4, %v1291_v3  ;;  %v156_v4 = vadd.f32 %v1622_v1, %v1398_v12 }
 0x6ea   :  { %1221 = vmatprep.subr.mxu1 %v1291_v3 }
 0x6eb   :  { %1222 = vmatpush3.msra.mxu1 %v1351_v5 }
 0x6ec   :  { %1223 = vmatprep.subr.mxu1 %v1291_v3 }
 0x6ed   :  { %1224 = vmatpush3.msra.mxu1 %v1360_v6 }
 0x6ee   :  { %1225 = vmatprep.subr.mxu1 %v1291_v3 }
 0x6ef   :  { %1226 = vmatpush3.msra.mxu1 %v1369_v7 }
 0x6f0   :  { %1227 = vmatprep.subr.mxu1 %v1291_v3 }
 0x6f1   :  { %1228 = vmatpush3.msra.mxu1 %v1378_v8 }
 0x6f2   :  { %1229 = vmatprep.subr.mxu1 %v1291_v3 }
 0x6f3   :  { %1230 = vmatpush3.msra.mxu1 %v1410_v18 }
 0x6f4   :  { %1231 = vmatprep.subr.mxu1 %v1291_v3 }
 0x6f5   :  { %1232 = vmatpush3.msra.mxu1 %v1415_v19 }
 0x6f6   :  { %1233 = vmatprep.subr.mxu1 %v1291_v3 }
 0x6f7   :  { %1234 = vmatpush3.msra.mxu1 %v1428_v20 }
 0x6f8   :  { %1235 = vmatprep.subr.mxu1 %v1291_v3 }
 0x6f9   :  { %1236 = vmatpush3.msra.mxu1 %v1436_v21 }
 0x6fa   :  { %1237 = vmatprep.subr.mxu1 %v1291_v3 }
 0x6fb   :  { %1238 = vmatpush3.msra.mxu1 %v1441_v22 }
 0x6fc   :  { %1239 = vmatprep.subr.mxu1 %v1291_v3 }
 0x6fd   :  { %1240 = vmatpush3.msra.mxu1 %v1451_v25 }
 0x6fe   :  { %1241 = vmatprep.subr.mxu1 %v1291_v3 }
 0x6ff   :  { %1242 = vmatpush3.msra.mxu1 %v1462_v27 }
 0x700   :  { %1243 = vmatprep.subr.mxu1 %v1291_v3 }
 0x701   :  { %1244 = vmatpush3.msra.mxu1 %v1474_v29 }
 0x702   :  { %1245 = vmatprep.subr.mxu1 %v1291_v3 }
 0x703   :  { %1246 = vmatpush3.msra.mxu1 %v1482_v30 }
 0x704   :  { %1247 = vmatprep.subr.mxu1 %v1291_v3 }
 0x705   :  { %1248 = vmatpush3.msra.mxu1 %v1492_v31 }
 0x706   :  { %1249 = vmatprep.subr.mxu1 %v1291_v3 }
 0x707   :  { %1250 = vmatpush3.msra.mxu1 %v1500_v32 }
 0x7a8   :  { %v628_v5 = vpop.f32.mrf.mxu1 }
 0x7a9   :  { %v632_v6 = vadd.f32 %v628_v5, %v156_v4 }
 0x7aa   :  { %v1183_v7 = vpop.f32.mrf.mxu1 }
 0x7ab   :  { %v633_v8 = vmul.f32 0.5, %v632_v6 }
 0x7ad   :  { %v634_v18 = vsel %vm1401_vm3, %v632_v6, %v633_v8 }
 0x7ae   :  { %1279 = vtanh.f32 %v634_v18 }
 0x7bb   :  { %v1280_v19 = vpop.eup %1279 }
 0x7bc   :  { %v636_v20 = vmul.f32 0.5, %v1280_v19 }
 0x7be   :  { %v637_v21 = vadd.f32 0.5, %v636_v20 }
 0x7c0   :  { %v638_v22 = vsel %vm1401_vm3, %v1280_v19, %v637_v21 }
 0x7c1   :  { %643 = vrot.lane.b32.xlu0 %v638_v22, %s1295_s8  ;;  %641 = vrot.lane.b32.xlu1 %v638_v22, %s1294_s28  ;;  %v646_v29 = vmul.f32 %v638_v22, %v559_v34 }
 0x7c5   :  { %639 = vrot.lane.b32.xlu1 %v638_v22, %s1293_s27 }
 0x833   :  { %v644_v3 = vpop.permute.xlu0 %643  ;;  %v642_v25 = vpop.permute.xlu1 %641 }
 0x834   :  { %v645_v27 = vmul.f32 %v644_v3, %v642_v25 }
 0x836   :  { %v647_v30 = vadd.f32 %v646_v29, %v645_v27 }
 0x837   :  { %v640_v32 = vpop.permute.xlu1 %639 }
 0x838   :  { %1281 = vtanh.f32 %v647_v30 }
 0x845   :  { %v1282_v31 = vpop.eup %1281 }
 0x846   :  { %v649_v1 = vmul.f32 %v1282_v31, %v640_v32 }
 0x848   :  { %1217 = vmatmul.mubr.f32.vlgmr.msra.gmra.mxu0 %v649_v1 }
 0x908   :  { %v716_v39 = vpop.f32.mrf.mxu0 }
 0x909   :  { %v720_v40 = vadd.f32 %v716_v39, %v161_v38 }
 0x90a   :  { %v1218_v41 = vpop.f32.mrf.mxu0 }
 0x90b   :  { %v721_v42 = vmul.f32 0.5, %v720_v40 }
 0x90d   :  { %v722_v43 = vsel %vm1401_vm3, %v720_v40, %v721_v42 }
 0x90e   :  { %1283 = vtanh.f32 %v722_v43 }
 0x91b   :  { %v1284_v44 = vpop.eup %1283 }
 0x91c   :  { %v724_v45 = vmul.f32 0.5, %v1284_v44 }
 0x91e   :  { %v725_v46 = vadd.f32 0.5, %v724_v45 }
 0x920   :  { %v726_v47 = vsel %vm1401_vm3, %v1284_v44, %v725_v46 }
 0x921   :  { %731 = vrot.lane.b32.xlu1 %v726_v47, %s1295_s8  ;;  %729 = vrot.lane.b32.xlu0 %v726_v47, %s1294_s28  ;;  %v734_v50 = vmul.f32 %v726_v47, %v647_v30 }
 0x925   :  { %727 = vrot.lane.b32.xlu0 %v726_v47, %s1293_s27 }
 0x993   :  { %v732_v11 = vpop.permute.xlu1 %731  ;;  %v730_v48 = vpop.permute.xlu0 %729 }
 0x994   :  { %v733_v49 = vmul.f32 %v732_v11, %v730_v48 }
 0x996   :  { %v735_v51 = vadd.f32 %v734_v50, %v733_v49 }
 0x997   :  { %v728_v53 = vpop.permute.xlu0 %727 }
 0x998   :  { %1285 = vtanh.f32 %v735_v51 }
 0x9a5   :  { %v1286_v52 = vpop.eup %1285 }
 0x9a6   :  { %v737_v54 = vmul.f32 %v1286_v52, %v728_v53 }
 0x9a8   :  { %1252 = vmatmul.mubr.f32.vlgmr.msra.gmra.mxu1 %v737_v54 }
 0xa68   :  { %v804_v56 = vpop.f32.mrf.mxu1 }
 0xa69   :  { %v808_v57 = vadd.f32 %v804_v56, %v166_v55 }
 0xa6a   :  { %v1253_v58 = vpop.f32.mrf.mxu1 }
 0xa6b   :  { %v809_v59 = vmul.f32 0.5, %v808_v57 }
 0xa6d   :  { %v810_v60 = vsel %vm1401_vm3, %v808_v57, %v809_v59 }
 0xa6e   :  { %1287 = vtanh.f32 %v810_v60 }
 0xa7b   :  { %v1288_v61 = vpop.eup %1287 }
 0xa7c   :  { %v812_v62 = vmul.f32 0.5, %v1288_v61 }
 0xa7e   :  { %v813_v63 = vadd.f32 0.5, %v812_v62 }
 0xa80   :  { %v814_v0 = vsel %vm1401_vm3, %v1288_v61, %v813_v63 }
 0xa81   :  { %819 = vrot.lane.b32.xlu0 %v814_v0, %s1295_s8  ;;  %817 = vrot.lane.b32.xlu1 %v814_v0, %s1294_s28  ;;  %v822_v14 = vmul.f32 %v814_v0, %v735_v51 }
 0xa85   :  { %815 = vrot.lane.b32.xlu1 %v814_v0, %s1293_s27 }
 0xaf3   :  { %v820_v12 = vpop.permute.xlu0 %819  ;;  %v818_v9 = vpop.permute.xlu1 %817 }
 0xaf4   :  { %v821_v13 = vmul.f32 %v820_v12, %v818_v9 }
 0xaf6   :  { %v823_v16 = vadd.f32 %v822_v14, %v821_v13 }
 0xaf7   :  { %v816_v23 = vpop.permute.xlu1 %815 }
 0xaf8   :  { %1289 = vtanh.f32 %v823_v16  ;;  %847 = vrot.lane.b32.xlu1 %v823_v16, %s1293_s27 }
 0xb05   :  { %v1290_v17 = vpop.eup %1289 }
 0xb06   :  { %v825_v24 = vmul.f32 %v1290_v17, %v816_v23 }
 0xb08   :  { %v833_v2 = vmul.f32 %v865_v15, %v825_v24  ;;  %v845_v36 = vsel %vm192_vm8, %v825_v24, 0.0 }
 0xb0a   :  { %834 = vadd.xlane.f32.xlu0 %v833_v2 }
 0xb6a   :  { %v848_v34 = vpop.permute.xlu1 %847 }
 0xb6b   :  { %v849_v4 = vsel %vm193_vm9, %v848_v34, 0.0 }
 0xb93   :  { %v835_v28 = vpop.xlane.xlu0 %834 }
 0xb94   :  { %v836_v33 = vsel %vm194_vm7, %v835_v28, 0.0 }
 0xb95   :  { %v844_v35 = vadd.f32 %v866_v26, %v836_v33 }
 0xb97   :  { %v846_v37 = vadd.f32 %v845_v36, %v844_v35 }
 0xb99   :  { %v850_v5 = vadd.f32 %v849_v4, %v846_v37 }
 0xb9b   :  { %851 = vst [vmem:[%s1803_s6] sm:$0xff] %v850_v5 }

</bundles_post_ra>
